<compile_context>
chip_gen: v7x
topology: tpu7x:2x2x1
jax: 0.10.0
libtpu: 0.0.40
codegen_flags: <defaults>
</compile_context>

<pallas_src>
import math

import jax
import jax.numpy as jnp
from jax.experimental import pallas as pl
from jax.experimental.pallas import tpu as pltpu


# ----------------------------------------------------------------------------
# Kernel 1: NetVLAD aggregation.
#   grid = (batch tiles [parallel], sample chunks [arbitrary reduction])
#   x     : (Bt, D, Nc)  features, compute dtype (bf16 streamed by default)
#   wct_b : (Bt, K, D)   cluster_weights^T, pre-broadcast over the batch tile
#   wc2t  : (K, D)       cluster_weights2[0]^T (f32)
#   s1,b1 : (K, 1)       folded BatchNorm1d(cluster_size)
#   out   : (Bt, K, D)   normalized VLAD, compute dtype (written in finalize)
#   acc   : (Bt, K, D)   f32 scratch accumulator (persists across chunks)
#   asum  : (Bt, K, 1)   f32 scratch accumulator of per-cluster softmax sums
# ----------------------------------------------------------------------------
def _make_vlad_kernel(n_chunk, n_valid, masked, approx):
    def kernel(x_ref, wctb_ref, wc2t_ref, s1_ref, b1_ref, out_ref,
               acc_ref, asum_ref):
        n_idx = pl.program_id(1)

        @pl.when(n_idx == 0)
        def _init():
            acc_ref[...] = jnp.zeros_like(acc_ref)
            asum_ref[...] = jnp.zeros_like(asum_ref)

        x = x_ref[...]                                    # (Bt, D, Nc)
        wct_b = wctb_ref[...]                             # (Bt, K, D)

        # activation[b, k, n] = sum_d wct[k, d] * x[b, d, n]   (batched MXU)
        act = jax.lax.dot_general(
            wct_b, x, (((2,), (1,)), ((0,), (0,))),
            preferred_element_type=jnp.float32)           # (Bt, K, Nc) f32

        act = act * s1_ref[...] + b1_ref[...]             # folded bn1
        # softmax over the cluster axis K (sublane axis)
        m = jnp.max(act, axis=1, keepdims=True)           # (Bt, 1, Nc)
        e = jnp.exp(act - m)
        denom = jnp.sum(e, axis=1, keepdims=True)         # (Bt, 1, Nc) >= 1
        if approx:
            p = e * pl.reciprocal(denom, approx=True)
        else:
            p = e / denom

        if masked:                                        # zero padded samples
            col = n_idx * n_chunk + jax.lax.broadcasted_iota(
                jnp.int32, (1, 1, n_chunk), 2)
            p = jnp.where(col < n_valid, p, 0.0)

        asum_ref[...] += jnp.sum(p, axis=2, keepdims=True)    # (Bt, K, 1)

        # vlad_partial[b, k, d] = sum_n p[b, k, n] * x[b, d, n]   (batched MXU)
        acc_ref[...] += jax.lax.dot_general(
            p.astype(x.dtype), x, (((2,), (2,)), ((0,), (0,))),
            preferred_element_type=jnp.float32)           # (Bt, K, D)

        @pl.when(n_idx == pl.num_programs(1) - 1)
        def _finalize():
            # Correction is linear in a_sum -> hoisted out of the chunk loop.
            v = acc_ref[...] - asum_ref[...] * wc2t_ref[...]      # (Bt, K, D)
            # F.normalize(vlad, dim=1): per-cluster L2 over the feature dim D.
            ss1 = jnp.maximum(jnp.sum(v * v, axis=2, keepdims=True), 1e-24)
            v = v * jax.lax.rsqrt(ss1) if approx else v / jnp.sqrt(ss1)
            # F.normalize over the flattened (K*D) descriptor.
            ss2 = jnp.maximum(
                jnp.sum(jnp.sum(v * v, axis=2, keepdims=True),
                        axis=1, keepdims=True), 1e-24)
            v = v * jax.lax.rsqrt(ss2) if approx else v / jnp.sqrt(ss2)
            out_ref[...] = v.astype(out_ref.dtype)

    return kernel


# ----------------------------------------------------------------------------
# Kernel 2: hidden projection + bn2 + context gating.
#   grid = (batch tiles [parallel], D*K reduction chunks [arbitrary])
#   v   : (Bt, DKc)  normalized flat VLAD chunk (compute dtype)
#   hw  : (DKc, O)   hidden1_weights (rows permuted to k*D+d order)
#   acc : (Bt, O)    f32 VMEM accumulator
# ----------------------------------------------------------------------------
def _head_kernel(v_ref, hw_ref, s2_ref, b2_ref, gw_ref, sg_ref, bg_ref,
                 out_ref, acc_ref):
    r = pl.program_id(1)

    @pl.when(r == 0)
    def _init():
        acc_ref[...] = jnp.zeros_like(acc_ref)

    hw = hw_ref[...]                                             # (DKc, O)
    acc_ref[...] += jnp.dot(v_ref[...].astype(hw.dtype), hw,
                            preferred_element_type=jnp.float32)

    @pl.when(r == pl.num_programs(1) - 1)
    def _finalize():
        h = acc_ref[...] * s2_ref[...] + b2_ref[...]             # folded bn2
        gw = gw_ref[...]                                         # (O, O)
        g = jnp.dot(h.astype(gw.dtype), gw,
                    preferred_element_type=jnp.float32)
        g = g * sg_ref[...] + bg_ref[...]                        # folded gating bn
        g = 1.0 / (1.0 + jnp.exp(-g))                            # sigmoid
        out_ref[...] = (h * g).astype(out_ref.dtype)


# ----------------------------------------------------------------------------
# Tiling helpers.
# ----------------------------------------------------------------------------
def _largest_divisor_leq(n, cap):
    cap = int(max(1, min(n, cap)))
    for t in range(cap, 0, -1):
        if n % t == 0:
            return t
    return 1


def _pick_chunk(total, target, align=128):
    """Largest align-multiple divisor of `total` <= target, else total."""
    if total <= target:
        return total
    c = (target // align) * align
    while c >= align:
        if total % c == 0:
            return c
        c -= align
    return total


def _pick_batch_tile(B, cap):
    """Batch tile for 2-D (batch, feature) blocks: a multiple-of-8 divisor of
    B (<= cap, and <= B//2 so the parallel axis can shard across v7x's two
    TensorCores) or the full batch (block dim == array dim is always legal)."""
    hi = min(cap, B // 2)
    for t in range(hi, 0, -1):
        if B % t == 0 and t % 8 == 0:
            return t
    return B


# ----------------------------------------------------------------------------
# Forward wrapper.
# ----------------------------------------------------------------------------
def netvlad_loupe_forward(x_nchw, params, *, compute_dtype=jnp.bfloat16):
    B, C, H, W = x_nchw.shape
    D = params["feature_size"]
    N = params["max_samples"]
    K = params["cluster_size"]
    O = params["output_dim"]
    assert C == D and H * W == N

    cd = jnp.dtype(compute_dtype)
    approx = cd != jnp.dtype(jnp.float32)
    item = cd.itemsize

    # (B, C, H, W) -> (B, D, N): pure view, no HBM transpose.  Stream x in the
    # compute dtype (the VLAD stage is HBM-bound; bf16 halves the read).
    x_dn = x_nchw.reshape(B, D, N).astype(cd)

    # --- sample-axis chunking (pad + in-kernel mask when N doesn't divide) --
    target_n = max(2048, (4 << 20) // max(1, D * item))        # ~4 MiB x rows
    target_n = min(target_n, max(512, (8 << 20) // max(1, 4 * K)))  # f32 act cap
    if N <= target_n:
        n_chunk, n_pad, masked = N, N, False
    else:
        n_steps = -(-N // target_n)
        per = -(-N // n_steps)
        n_chunk = -(-per // 128) * 128
        n_pad = n_chunk * n_steps
        masked = n_pad != N
        if masked:
            x_dn = jnp.pad(x_dn, ((0, 0), (0, 0), (0, n_pad - N)))

    # --- batch tile: keep double-buffered x blocks a few MiB, bound the f32
    #     activation temporaries, and leave >= 2 batch tiles for v7x megacore.
    bt_cap = max(1, (8 << 20) // max(1, D * n_chunk * item))
    bt_cap = min(bt_cap, max(1, (6 << 20) // max(1, 4 * K * n_chunk)))
    bt_cap = min(bt_cap, 16)
    if B >= 2:
        bt_cap = max(1, min(bt_cap, B // 2))
    b_tile = _largest_divisor_leq(B, bt_cap)

    # MXU operands in compute dtype; cluster_weights^T pre-broadcast over the
    # batch tile so both kernel matmuls are plain batched dot_generals.
    wct_b = jnp.broadcast_to(
        params["cluster_weights_t"].astype(cd)[None], (b_tile, K, D))
    wc2t = params["cluster_weights2_t"].astype(jnp.float32)     # (K, D)

    vlad = pl.pallas_call(
        _make_vlad_kernel(n_chunk, N, masked, approx),
        out_shape=jax.ShapeDtypeStruct((B, K, D), cd),
        grid=(B // b_tile, n_pad // n_chunk),
        in_specs=[
            pl.BlockSpec((b_tile, D, n_chunk), lambda b, n: (b, 0, n)),
            pl.BlockSpec((b_tile, K, D), lambda b, n: (0, 0, 0)),
            pl.BlockSpec((K, D), lambda b, n: (0, 0)),
            pl.BlockSpec((K, 1), lambda b, n: (0, 0)),
            pl.BlockSpec((K, 1), lambda b, n: (0, 0)),
        ],
        out_specs=pl.BlockSpec((b_tile, K, D), lambda b, n: (b, 0, 0)),
        scratch_shapes=[pltpu.VMEM((b_tile, K, D), jnp.float32),
                        pltpu.VMEM((b_tile, K, 1), jnp.float32)],
        compiler_params=pltpu.CompilerParams(
            dimension_semantics=("parallel", "arbitrary"),
            vmem_limit_bytes=48 << 20),
    )(x_dn, wct_b, wc2t, params["bn1_scale"], params["bn1_bias"])

    # (B, K, D) -> (B, K*D); flat index k*D + d (hidden weights pre-permuted).
    vlad_flat = vlad.reshape(B, K * D)

    # --- Head: hidden projection + bn2 + context gating ---------------------
    dk = K * D
    dk_chunk = _pick_chunk(dk, target=8192)
    bt2 = _pick_batch_tile(B, cap=256)

    hw = params["hidden1_weights_perm"].astype(cd)               # (K*D, O)
    gw = params["gating_weights"].astype(cd)                     # (O, O)

    out = pl.pallas_call(
        _head_kernel,
        out_shape=jax.ShapeDtypeStruct((B, O), jnp.float32),
        grid=(B // bt2, dk // dk_chunk),
        in_specs=[
            pl.BlockSpec((bt2, dk_chunk), lambda b, r: (b, r)),
            pl.BlockSpec((dk_chunk, O), lambda b, r: (r, 0)),
            pl.BlockSpec((1, O), lambda b, r: (0, 0)),
            pl.BlockSpec((1, O), lambda b, r: (0, 0)),
            pl.BlockSpec((O, O), lambda b, r: (0, 0)),
            pl.BlockSpec((1, O), lambda b, r: (0, 0)),
            pl.BlockSpec((1, O), lambda b, r: (0, 0)),
        ],
        out_specs=pl.BlockSpec((bt2, O), lambda b, r: (b, 0)),
        scratch_shapes=[pltpu.VMEM((bt2, O), jnp.float32)],
        compiler_params=pltpu.CompilerParams(
            dimension_semantics=("parallel", "arbitrary"),
            vmem_limit_bytes=48 << 20),
    )(vlad_flat, hw, params["bn2_scale"], params["bn2_bias"],
      gw, params["gbn_scale"], params["gbn_bias"])
    return out


# ----------------------------------------------------------------------------
# Parameter construction (matching the torch module's initializers, with
# offline layout plumbing for the kernel-friendly layouts).
# ----------------------------------------------------------------------------
def _folded_bn(n, eps=1e-5):
    """Default-initialized BatchNorm1d folded to (scale, bias), inference mode."""
    gamma = jnp.ones((n,), jnp.float32)
    beta = jnp.zeros((n,), jnp.float32)
    mean = jnp.zeros((n,), jnp.float32)
    var = jnp.ones((n,), jnp.float32)
    scale = gamma / jnp.sqrt(var + eps)
    bias = beta - mean * scale
    return scale, bias


def init_params(key, feature_size, max_samples, cluster_size, output_dim):
    D, K, O = feature_size, cluster_size, output_dim
    k0, k1, k2, k3 = jax.random.split(key, 4)
    inv_sqrt_d = 1.0 / math.sqrt(D)
    inv_sqrt_o = 1.0 / math.sqrt(O)

    cluster_weights = jax.random.normal(k0, (D, K), jnp.float32) * inv_sqrt_d
    cluster_weights2 = jax.random.normal(k1, (1, D, K), jnp.float32) * inv_sqrt_d
    hidden1_weights = jax.random.normal(k2, (K * D, O), jnp.float32) * inv_sqrt_d
    gating_weights = jax.random.normal(k3, (O, O), jnp.float32) * inv_sqrt_o

    # Offline layout plumbing:
    cluster_weights_t = jnp.transpose(cluster_weights)            # (K, D)
    cluster_weights2_t = jnp.transpose(cluster_weights2[0])       # (K, D)
    # torch flattens vlad (B, D, K) -> row index d*K + k; the kernel emits
    # (B, K, D) -> k*D + d, so permute hidden1_weights rows accordingly.
    hidden1_weights_perm = (hidden1_weights
                            .reshape(D, K, O)
                            .transpose(1, 0, 2)
                            .reshape(K * D, O))

    bn1_scale, bn1_bias = _folded_bn(K)
    bn2_scale, bn2_bias = _folded_bn(O)
    gbn_scale, gbn_bias = _folded_bn(O)

    return dict(
        feature_size=D, max_samples=max_samples,
        cluster_size=K, output_dim=O,
        cluster_weights_t=cluster_weights_t,
        cluster_weights2_t=cluster_weights2_t,
        hidden1_weights_perm=hidden1_weights_perm,
        gating_weights=gating_weights,
        bn1_scale=bn1_scale.reshape(K, 1), bn1_bias=bn1_bias.reshape(K, 1),
        bn2_scale=bn2_scale.reshape(1, O), bn2_bias=bn2_bias.reshape(1, O),
        gbn_scale=gbn_scale.reshape(1, O), gbn_bias=gbn_bias.reshape(1, O),
    )


# ----------------------------------------------------------------------------
# Pure-JAX reference following the torch forward verbatim (for validation).
# ----------------------------------------------------------------------------
def netvlad_loupe_reference(x_nchw, params):
    B = x_nchw.shape[0]
    D = params["feature_size"]
    N = params["max_samples"]
    K = params["cluster_size"]

    x = jnp.transpose(x_nchw, (0, 3, 2, 1)).reshape(B, N, D).astype(jnp.float32)
    wc = params["cluster_weights_t"].T                       # (D, K)
    wc2 = params["cluster_weights2_t"].T[None]               # (1, D, K)
    hw = (params["hidden1_weights_perm"]
          .reshape(K, D, -1).transpose(1, 0, 2).reshape(D * K, -1))  # torch order

    act = jnp.einsum("bnd,dk->bnk", x, wc, precision="highest")
    act = (act * params["bn1_scale"].reshape(1, 1, K)
           + params["bn1_bias"].reshape(1, 1, K))
    act = jax.nn.softmax(act, axis=-1)
    a_sum = jnp.sum(act, axis=1, keepdims=True)              # (B, 1, K)
    a = a_sum * wc2                                          # (B, D, K)
    vlad = jnp.einsum("bnk,bnd->bdk", act, x, precision="highest") - a
    vlad = vlad / jnp.maximum(
        jnp.linalg.norm(vlad, axis=1, keepdims=True), 1e-12)
    vlad = vlad.reshape(B, D * K)
    vlad = vlad / jnp.maximum(
        jnp.linalg.norm(vlad, axis=1, keepdims=True), 1e-12)
    h = jnp.matmul(vlad, hw, precision="highest")
    h = h * params["bn2_scale"] + params["bn2_bias"]
    g = jnp.matmul(h, params["gating_weights"], precision="highest")
    g = g * params["gbn_scale"] + params["gbn_bias"]
    g = jax.nn.sigmoid(g)
    return h * g


if __name__ == "__main__":
    # Small shapes consistent with the module: NCHW input, feature_size = C,
    # max_samples = H * W.
    B, D, H, W = 2, 16, 8, 8
    N = H * W          # max_samples = 64
    K = 8              # cluster_size
    O = 32             # output_dim

    key = jax.random.PRNGKey(0)
    kx, kp = jax.random.split(key)
    x = jax.random.normal(kx, (B, D, H, W), jnp.float32)
    params = init_params(kp, D, N, K, O)

    # Default (bf16 streaming / bf16 MXU operands) path.
    out = netvlad_loupe_forward(x, params)
    out = jax.block_until_ready(out)
    assert out.shape == (B, O)
    assert bool(jnp.all(jnp.isfinite(out)))

    # Validate against the pure-JAX reference: f32 path (tight), bf16 (loose).
    ref = netvlad_loupe_reference(x, params)
    out_f32 = jax.block_until_ready(
        netvlad_loupe_forward(x, params, compute_dtype=jnp.float32))
    assert bool(jnp.allclose(out_f32, ref, rtol=1e-2, atol=1e-2)), (
        float(jnp.max(jnp.abs(out_f32 - ref))))
    assert bool(jnp.allclose(out, ref, rtol=1.2e-1, atol=1.2e-1)), (
        float(jnp.max(jnp.abs(out - ref))))

    print("KERNEL_OK")
</pallas_src>

<mosaic_0001>
module attributes {stable_mosaic.version = 11 : i64} {
  func.func @kernel(%arg0: i32, %arg1: i32, %arg2: memref<1x16x64xbf16, #tpu.memory_space<vmem>>, %arg3: memref<1x8x16xbf16, #tpu.memory_space<vmem>>, %arg4: memref<8x16xf32, #tpu.memory_space<vmem>>, %arg5: memref<8x1xf32, #tpu.memory_space<vmem>>, %arg6: memref<8x1xf32, #tpu.memory_space<vmem>>, %arg7: memref<1x8x16xbf16, #tpu.memory_space<vmem>>, %arg8: memref<1x8x16xf32, #tpu.memory_space<vmem>>, %arg9: memref<1x8x1xf32, #tpu.memory_space<vmem>>) attributes {dimension_semantics = [#tpu.dimension_semantics<parallel>, #tpu.dimension_semantics<arbitrary>], iteration_bounds = array<i64: 2, 1>, scalar_prefetch = 0 : i64, scratch_operands = 2 : i64, tpu.core_type = #tpu.core_type<tc>, window_params = [{transform_indices = @transform_0, window_bounds = array<i64: 1, 16, 64>}, {pipeline_mode = #tpu.pipeline_mode<synchronous>, transform_indices = @transform_1, window_bounds = array<i64: 1, 8, 16>}, {pipeline_mode = #tpu.pipeline_mode<synchronous>, transform_indices = @transform_2, window_bounds = array<i64: 8, 16>}, {pipeline_mode = #tpu.pipeline_mode<synchronous>, transform_indices = @transform_3, window_bounds = array<i64: 8, 1>}, {pipeline_mode = #tpu.pipeline_mode<synchronous>, transform_indices = @transform_4, window_bounds = array<i64: 8, 1>}, {transform_indices = @transform_5, window_bounds = array<i64: 1, 8, 16>}]} {
    %c0_i32 = arith.constant 0 : i32
    %0 = arith.cmpi eq, %arg1, %c0_i32 : i32
    %1 = arith.extui %0 : i1 to i32
    %c0_i32_0 = arith.constant 0 : i32
    %2 = arith.cmpi ne, %1, %c0_i32_0 : i32
    scf.if %2 {
      %cst_28 = arith.constant 0.000000e+00 : f32
      %37 = vector.broadcast %cst_28 : f32 to vector<1x8x16xf32>
      %c0_29 = arith.constant 0 : index
      %c0_30 = arith.constant 0 : index
      %c0_31 = arith.constant 0 : index
      %38 = vector.load %arg8[%c0_29, %c0_30, %c0_31] : memref<1x8x16xf32, #tpu.memory_space<vmem>>, vector<1x8x16xf32>
      tpu.vector_store %arg8[%c0_29, %c0_30, %c0_31], %37 {strides = array<i32>} : memref<1x8x16xf32, #tpu.memory_space<vmem>>, vector<1x8x16xf32>,
      %cst_32 = arith.constant 0.000000e+00 : f32
      %39 = vector.broadcast %cst_32 : f32 to vector<1x8x1xf32>
      %c0_33 = arith.constant 0 : index
      %c0_34 = arith.constant 0 : index
      %c0_35 = arith.constant 0 : index
      %40 = vector.load %arg9[%c0_33, %c0_34, %c0_35] : memref<1x8x1xf32, #tpu.memory_space<vmem>>, vector<1x8x1xf32>
      tpu.vector_store %arg9[%c0_33, %c0_34, %c0_35], %39 {strides = array<i32>} : memref<1x8x1xf32, #tpu.memory_space<vmem>>, vector<1x8x1xf32>,
    } else {
    }
    %c0 = arith.constant 0 : index
    %c0_1 = arith.constant 0 : index
    %c0_2 = arith.constant 0 : index
    %3 = vector.load %arg2[%c0, %c0_1, %c0_2] : memref<1x16x64xbf16, #tpu.memory_space<vmem>>, vector<1x16x64xbf16>
    %c0_3 = arith.constant 0 : index
    %c0_4 = arith.constant 0 : index
    %c0_5 = arith.constant 0 : index
    %4 = vector.load %arg3[%c0_3, %c0_4, %c0_5] : memref<1x8x16xbf16, #tpu.memory_space<vmem>>, vector<1x8x16xbf16>
    %cst = arith.constant dense<0.000000e+00> : vector<1x8x64xf32>
    %5 = tpu.matmul %4, %3, %cst {dimension_numbers = #tpu.dot_dimension_numbers<[2], [1], [1], [2], [0, 0, 0, 1, 1, 2], [0], [0]>} : vector<1x8x16xbf16>, vector<1x16x64xbf16>, vector<1x8x64xf32> -> vector<1x8x64xf32>
    %c0_6 = arith.constant 0 : index
    %c0_7 = arith.constant 0 : index
    %6 = vector.load %arg5[%c0_6, %c0_7] : memref<8x1xf32, #tpu.memory_space<vmem>>, vector<8x1xf32>
    %7 = vector.shape_cast %6 : vector<8x1xf32> to vector<1x8x1xf32>
    %8 = vector.broadcast %7 : vector<1x8x1xf32> to vector<1x8x64xf32>
    %9 = arith.mulf %5, %8 : vector<1x8x64xf32>
    %c0_8 = arith.constant 0 : index
    %c0_9 = arith.constant 0 : index
    %10 = vector.load %arg6[%c0_8, %c0_9] : memref<8x1xf32, #tpu.memory_space<vmem>>, vector<8x1xf32>
    %11 = vector.shape_cast %10 : vector<8x1xf32> to vector<1x8x1xf32>
    %12 = vector.broadcast %11 : vector<1x8x1xf32> to vector<1x8x64xf32>
    %13 = arith.addf %9, %12 : vector<1x8x64xf32>
    %cst_10 = arith.constant dense<0xFF800000> : vector<1x64xf32>
    %14 = vector.multi_reduction <maximumf>, %13, %cst_10 [1] : vector<1x8x64xf32> to vector<1x64xf32>
    %15 = vector.shape_cast %14 : vector<1x64xf32> to vector<1x1x64xf32>
    %16 = vector.broadcast %15 : vector<1x1x64xf32> to vector<1x8x64xf32>
    %17 = arith.subf %13, %16 : vector<1x8x64xf32>
    %18 = math.exp %17 : vector<1x8x64xf32>
    %cst_11 = arith.constant dense<0.000000e+00> : vector<1x64xf32>
    %19 = vector.multi_reduction <add>, %18, %cst_11 [1] : vector<1x8x64xf32> to vector<1x64xf32>
    %20 = vector.shape_cast %19 : vector<1x64xf32> to vector<1x1x64xf32>
    %21 = tpu.reciprocal %20 {approx = true} : vector<1x1x64xf32> -> vector<1x1x64xf32>
    %22 = vector.broadcast %21 : vector<1x1x64xf32> to vector<1x8x64xf32>
    %23 = arith.mulf %18, %22 : vector<1x8x64xf32>
    %c0_12 = arith.constant 0 : index
    %c0_13 = arith.constant 0 : index
    %c0_14 = arith.constant 0 : index
    %24 = vector.load %arg9[%c0_12, %c0_13, %c0_14] : memref<1x8x1xf32, #tpu.memory_space<vmem>>, vector<1x8x1xf32>
    %cst_15 = arith.constant dense<0.000000e+00> : vector<1x8xf32>
    %25 = vector.multi_reduction <add>, %23, %cst_15 [2] : vector<1x8x64xf32> to vector<1x8xf32>
    %26 = vector.shape_cast %25 : vector<1x8xf32> to vector<1x8x1xf32>
    %27 = arith.addf %24, %26 : vector<1x8x1xf32>
    %c0_16 = arith.constant 0 : index
    %c0_17 = arith.constant 0 : index
    %c0_18 = arith.constant 0 : index
    %28 = vector.load %arg9[%c0_16, %c0_17, %c0_18] : memref<1x8x1xf32, #tpu.memory_space<vmem>>, vector<1x8x1xf32>
    tpu.vector_store %arg9[%c0_16, %c0_17, %c0_18], %27 {strides = array<i32>} : memref<1x8x1xf32, #tpu.memory_space<vmem>>, vector<1x8x1xf32>,
    %c0_19 = arith.constant 0 : index
    %c0_20 = arith.constant 0 : index
    %c0_21 = arith.constant 0 : index
    %29 = vector.load %arg8[%c0_19, %c0_20, %c0_21] : memref<1x8x16xf32, #tpu.memory_space<vmem>>, vector<1x8x16xf32>
    %30 = arith.truncf %23 : vector<1x8x64xf32> to vector<1x8x64xbf16>
    %cst_22 = arith.constant dense<0.000000e+00> : vector<1x8x16xf32>
    %31 = tpu.matmul %30, %3, %cst_22 {dimension_numbers = #tpu.dot_dimension_numbers<[2], [2], [1], [1], [0, 0, 0, 1, 1, 1], [0], [0]>} : vector<1x8x64xbf16>, vector<1x16x64xbf16>, vector<1x8x16xf32> -> vector<1x8x16xf32>
    %32 = arith.addf %29, %31 : vector<1x8x16xf32>
    %c0_23 = arith.constant 0 : index
    %c0_24 = arith.constant 0 : index
    %c0_25 = arith.constant 0 : index
    %33 = vector.load %arg8[%c0_23, %c0_24, %c0_25] : memref<1x8x16xf32, #tpu.memory_space<vmem>>, vector<1x8x16xf32>
    tpu.vector_store %arg8[%c0_23, %c0_24, %c0_25], %32 {strides = array<i32>} : memref<1x8x16xf32, #tpu.memory_space<vmem>>, vector<1x8x16xf32>,
    %c0_i32_26 = arith.constant 0 : i32
    %34 = arith.cmpi eq, %arg1, %c0_i32_26 : i32
    %35 = arith.extui %34 : i1 to i32
    %c0_i32_27 = arith.constant 0 : i32
    %36 = arith.cmpi ne, %35, %c0_i32_27 : i32
    scf.if %36 {
      %c0_28 = arith.constant 0 : index
      %c0_29 = arith.constant 0 : index
      %c0_30 = arith.constant 0 : index
      %37 = vector.load %arg8[%c0_28, %c0_29, %c0_30] : memref<1x8x16xf32, #tpu.memory_space<vmem>>, vector<1x8x16xf32>
      %c0_31 = arith.constant 0 : index
      %c0_32 = arith.constant 0 : index
      %c0_33 = arith.constant 0 : index
      %38 = vector.load %arg9[%c0_31, %c0_32, %c0_33] : memref<1x8x1xf32, #tpu.memory_space<vmem>>, vector<1x8x1xf32>
      %c0_34 = arith.constant 0 : index
      %c0_35 = arith.constant 0 : index
      %39 = vector.load %arg4[%c0_34, %c0_35] : memref<8x16xf32, #tpu.memory_space<vmem>>, vector<8x16xf32>
      %40 = vector.shape_cast %39 : vector<8x16xf32> to vector<1x8x16xf32>
      %41 = vector.broadcast %38 : vector<1x8x1xf32> to vector<1x8x16xf32>
      %42 = arith.mulf %41, %40 : vector<1x8x16xf32>
      %43 = arith.subf %37, %42 : vector<1x8x16xf32>
      %44 = arith.mulf %43, %43 : vector<1x8x16xf32>
      %cst_36 = arith.constant dense<0.000000e+00> : vector<1x8xf32>
      %45 = vector.multi_reduction <add>, %44, %cst_36 [2] : vector<1x8x16xf32> to vector<1x8xf32>
      %46 = vector.shape_cast %45 : vector<1x8xf32> to vector<1x8x1xf32>
      %cst_37 = arith.constant 1.000000e-24 : f32
      %47 = vector.broadcast %cst_37 : f32 to vector<1x8x1xf32>
      %48 = arith.maximumf %46, %47 : vector<1x8x1xf32>
      %49 = math.rsqrt %48 : vector<1x8x1xf32>
      %50 = vector.broadcast %49 : vector<1x8x1xf32> to vector<1x8x16xf32>
      %51 = arith.mulf %43, %50 : vector<1x8x16xf32>
      %52 = arith.mulf %51, %51 : vector<1x8x16xf32>
      %cst_38 = arith.constant dense<0.000000e+00> : vector<1x8xf32>
      %53 = vector.multi_reduction <add>, %52, %cst_38 [2] : vector<1x8x16xf32> to vector<1x8xf32>
      %54 = vector.shape_cast %53 : vector<1x8xf32> to vector<1x8x1xf32>
      %cst_39 = arith.constant dense<0.000000e+00> : vector<1x1xf32>
      %55 = vector.multi_reduction <add>, %54, %cst_39 [1] : vector<1x8x1xf32> to vector<1x1xf32>
      %56 = vector.shape_cast %55 : vector<1x1xf32> to vector<1x1x1xf32>
      %cst_40 = arith.constant 1.000000e-24 : f32
      %57 = vector.broadcast %cst_40 : f32 to vector<1x1x1xf32>
      %58 = arith.maximumf %56, %57 : vector<1x1x1xf32>
      %59 = math.rsqrt %58 : vector<1x1x1xf32>
      %60 = vector.broadcast %59 : vector<1x1x1xf32> to vector<1x8x16xf32>
      %61 = arith.mulf %51, %60 : vector<1x8x16xf32>
      %62 = arith.truncf %61 : vector<1x8x16xf32> to vector<1x8x16xbf16>
      %c0_41 = arith.constant 0 : index
      %c0_42 = arith.constant 0 : index
      %c0_43 = arith.constant 0 : index
      %63 = vector.load %arg7[%c0_41, %c0_42, %c0_43] : memref<1x8x16xbf16, #tpu.memory_space<vmem>>, vector<1x8x16xbf16>
      tpu.vector_store %arg7[%c0_41, %c0_42, %c0_43], %62 {strides = array<i32>} : memref<1x8x16xbf16, #tpu.memory_space<vmem>>, vector<1x8x16xbf16>,
    } else {
    }
    return
  }
  func.func @transform_0(%arg0: i32, %arg1: i32) -> (i32, i32, i32) {
    %c0_i32 = arith.constant 0 : i32
    %c0_i32_0 = arith.constant 0 : i32
    return %arg0, %c0_i32, %arg1 : i32, i32, i32
  }
  func.func @transform_1(%arg0: i32, %arg1: i32) -> (i32, i32, i32) {
    %c0_i32 = arith.constant 0 : i32
    %c0_i32_0 = arith.constant 0 : i32
    %c0_i32_1 = arith.constant 0 : i32
    %c0_i32_2 = arith.constant 0 : i32
    return %c0_i32, %c0_i32_0, %c0_i32_1 : i32, i32, i32
  }
  func.func @transform_2(%arg0: i32, %arg1: i32) -> (i32, i32) {
    %c0_i32 = arith.constant 0 : i32
    %c0_i32_0 = arith.constant 0 : i32
    %c0_i32_1 = arith.constant 0 : i32
    return %c0_i32, %c0_i32_0 : i32, i32
  }
  func.func @transform_3(%arg0: i32, %arg1: i32) -> (i32, i32) {
    %c0_i32 = arith.constant 0 : i32
    %c0_i32_0 = arith.constant 0 : i32
    %c0_i32_1 = arith.constant 0 : i32
    return %c0_i32, %c0_i32_0 : i32, i32
  }
  func.func @transform_4(%arg0: i32, %arg1: i32) -> (i32, i32) {
    %c0_i32 = arith.constant 0 : i32
    %c0_i32_0 = arith.constant 0 : i32
    %c0_i32_1 = arith.constant 0 : i32
    return %c0_i32, %c0_i32_0 : i32, i32
  }
  func.func @transform_5(%arg0: i32, %arg1: i32) -> (i32, i32, i32) {
    %c0_i32 = arith.constant 0 : i32
    %c0_i32_0 = arith.constant 0 : i32
    %c0_i32_1 = arith.constant 0 : i32
    return %arg0, %c0_i32, %c0_i32_0 : i32, i32, i32
  }
}

</mosaic_0001>

<bundles_post_ra>
// kernel: tpu_custom_call.1
= control target key start
LH: loop header
LB: loop body
LE: loop exit
PB: predicated region body
PF: predicated region fallthrough
CT: control target
= control target key end

     0   :  { %10 = vsyncpa [#allocation5], 0  ;;  %s979_s0 = inlined_call_operand.vmem [shape: bf16[2,16,64], index: 0, kind: input, shape index: {}]   ;;  %s980_s1 = inlined_call_operand.hbm [shape: bf16[1,8,16], index: 1, kind: input, shape index: {}]   ;;  %s981_s2 = inlined_call_operand.vmem [shape: f32[8,16], index: 2, kind: input, shape index: {}]   ;;  %s982_s3 = inlined_call_operand.vmem [shape: f32[8,1], index: 3, kind: input, shape index: {}]   ;;  %s983_s4 = inlined_call_operand.vmem [shape: f32[8,1], index: 4, kind: input, shape index: {}]   ;;  %s984_s5 = inlined_call_operand.hbm [shape: bf16[2,8,16], index: 5, kind: output, shape index: {}]  }
   0x1   :  { %11 = vsyncpa [#allocation6], 0 }
   0x2   :  { %13 = vsyncpa [#allocation6 + $0x1], 0  ;;  %s808_s18 = smov 0   ;;  %s810_s19 = smov 0  }
   0x3   :  { %s812_s20 = smov 0   ;;  %s814_s21 = smov 0  }
   0x4   :  { %s816_s22 = smov 0   ;;  %s818_s23 = smov 0  }
   0x5 LB: > { %s547_s24 = sadd.s32 4294967295, %s771_s23   ;;  %s548_s25 = sadd.s32 4294967294, %s771_s23   ;;  %s771_s23 = sphi %s818_s23, %s19_s23   ;;  %s767_s22 = sphi %s816_s22, %s1002_s22   ;;  %s763_s21 = sphi %s814_s21, %s1001_s21   ;;  %s759_s20 = sphi %s812_s20, %s1000_s20   ;;  %s755_s19 = sphi %s810_s19, %s999_s19   ;;  %s751_s18 = sphi %s808_s18, %s998_s18  }
   0x6   : > { %s31_s26 = sadd.s32 1, %s767_s22  ;;  %s150_s27 = sadd.s32 1, %s759_s20 }
   0x7   : > { %p33_p0 = scmp.ge.s32.totalorder %s31_s26, 2  ;;  %p160_p1 = scmp.ne.s32.totalorder %s759_s20, %s755_s19 }
   0x8   : > { %p161_p2 = scmp.eq.s32.totalorder %s547_s24, 1  ;;  %p166_p3 = scmp.ne.s32.totalorder %s755_s19, %s751_s18 }
   0x9   : > { %s1004_s26 = smov (%p33_p0, %s31_s26), 0  ;;  %p167_p5 = scmp.eq.s32.totalorder %s548_s25, 1 }
   0xa   : > { %p848_p4 = por %p161_p2, %p160_p1  ;;  %s147_s29 = ssub.s32 %s767_s22, %s1004_s26 }
   0xb   : > { %p549_p6 = scmp.ge.s32.totalorder %s771_s23, 1  ;;  %p148_p7 = scmp.eq.s32.totalorder %s147_s29, 0 }
   0xc   : > { %s989_s28 = scalar_select %p848_p4, 1, 0 }
   0xd   : > { %p855_p8 = por %p167_p5, %p166_p3  ;;  %p174_p9 = scmp.lt.s32.totalorder %s771_s23, 3 }
   0xe   : > { %s861_s6 = scalar_select %p148_p7, %s759_s20, %s150_s27  }
   0xf   : > { %s990_s30 = scalar_select %p855_p8, 1, 0 }
  0x10   : > { %p863_p10 = pnand %p549_p6, %p174_p9  ;;  %p867_p11 = scmp.eq.s32.totalorder %s547_s24, 0 }
  0x11   : > { %s773_s9 = smov [#allocation4]   ;;  %s661_s14 = scalar_lea.hbm %s980_s1, 64 }
  0x12   : > { %s991_s7 = scalar_select %p863_p10, 1, 0 }
  0x13   : > { %s992_s8 = scalar_select %p867_p11, 1, 0 }
  0x14   : > { %p587_p12 = pneg %p863_p10  ;;  %s187_s10 = sshll.u32 %s773_s9, 4  ;;  %s188_s10 = int_to_ptr.vmem [resolvable:$true] %s187_s10 }
  0x15   : > { %p662_p0 = scmp.ne.s32.totalorder %s980_s1, %s661_s14  ;;  %p668_p5 = scmp.lt.u32.totalorder %s661_s14, %s980_s1 }
  0x16   : > { %p875_p13 = pnand %p867_p11, %p587_p12 }
  0x18   : > { %p663_p1 = pneg %p875_p13 }
  0x1a   : > { %p664_p2 = pnand %p663_p1, %p662_p0 }
  0x1c   : > { %p665_p3 = pneg %p664_p2 }
  0x1e   : > { %p670_p6 = pnand %p668_p5, %p665_p3 }
  0x20   : > { %673 = shalt.err (!%p670_p6)
}
  0x21   : > { %s674_s25 = scalar_lea.vmem %s188_s10, 64  ;;  %p682_p8 = scmp.lt.s32.totalorder %s188_s10, %s188_s10 }
  0x22   : > { %p675_p7 = scmp.ne.s32.totalorder %s188_s10, %s674_s25  ;;  %p683_p4 = scmp.lt.s32.totalorder %s674_s25, %s674_s25 }
  0x24   : > { %p677_p9 = pnand %p675_p7, %p663_p1  ;;  %p684_p11 = por %p683_p4, %p682_p8 }
  0x26   : > { %p678_p12 = pneg %p677_p9 }
  0x28   : > { %p685_p10 = pnand %p684_p11, %p678_p12 }
  0x2a   : > { %688 = shalt.err (!%p685_p10)
}
  0x2b   : > { %590 = dma.hbm_to_vmem [thread:$0]  (!%p875_p13), %s980_s1, 64, %s188_s10, [#allocation5]  }
  0x2c   : > { %p994_p0 = scmp.ne.s32.totalorder %s991_s7, 0 }
  0x2d   : > { %p995_p2 = scmp.ne.s32.totalorder (!%p994_p0), %s992_s8, 0 }
  0x2e   : > { %220 = sbr.rel (%p994_p0) target bundleno = 967 (0x3c7), region = 40 }
  0x35   : > { %742 = dma.done.wait (%p995_p2), [#allocation5], 64  }
  0x36   : > { %744 = vsyncadd (%p995_p2), [#allocation5], 4294967232  ;;  %p251_p4 = scmp.lt.s32.totalorder %s763_s21, 1  ;;  %vm264_vm0 = vcmask 130048   ;;  %v774_v0 = vmov 0.0   ;;  %vm775_vm1 = vmmov 0  }
  0x37   : > { %569 = vmatprep.subr.bf16.mxu0 %v774_v0  ;;  %571 = vmatprep.mubr.msk.bf16.mxu0 %vm775_vm1, %v774_v0  ;;  %265 = vst.msk [vmem:[#allocation2] sm:$0xff] %vm264_vm0, %v774_v0  ;;  %v776_v1 = vmov 0   ;;  %v321_v3 = vld [vmem:[%s982_s3] sm:$0xff]  ;;  %v270_v4 = vld [vmem:[#allocation4] sm:$0xf]  ;;  %vm335_vm2 = vcmask 523264  }
  0x38   : > { %s252_s9 = scalar_select %p251_p4, %s763_s21, 1  ;;  %650 = vset.pattern.permute.xlu0 %v776_v1  ;;  %575 = vmatprep.subr.bf16.mxu1 %v774_v0  ;;  %v328_v5 = vld [vmem:[%s983_s4] sm:$0xff]  ;;  %vm266_vm3 = vcmask 7168   ;;  %vm446_vm4 = vcmask 125952  }
  0x39   : > { %577 = vmatprep.mubr.msk.bf16.mxu1 %vm775_vm1, %v774_v0  ;;  %651 = vset.pattern.permute.xlu1 %v776_v1  ;;  %267 = vst.msk [vmem:[#allocation3] sm:$0xff] %vm266_vm3, %v774_v0  ;;  %v417_v46 = vld [vmem:[%s981_s2] sm:$0xff]  ;;  %s248_s24 = sand.u32 1, %s755_s19   ;;  %s561_s27 = sshll.u32 %s763_s21, 6 }
  0x3a   : > { %s564_s7 = sshll.u32 %s252_s9, 3  ;;  %324 = vperm.xlu0 %650, %v321_v3   ;;  %s554_s25 = sshll.u32 %s248_s24, 2 }
  0x3b   : > { %s258_s11 = scalar_lea.vmem %s979_s0, %s564_s7  ;;  %s250_s29 = scalar_lea.vmem [#allocation7], %s554_s25 }
  0x3c   : > { %v652_v2 = vld [vmem:[%s258_s11] sm:$0xff]   ;;  %s462_s9 = sshll.u32 %s250_s29, 4  ;;  %s932_s8 = scalar_lea.hbm %s984_s5, %s561_s27  ;;  %s934_s9 = int_to_ptr.vmem [resolvable:$true] %s462_s9 }
  0x3d   : > { %570 = vmatpush3.bf16.msra.mxu0 %v652_v2  ;;  %v368_v6 = vsel %vm335_vm2, %v652_v2, 0  ;;  %s449_s11 = scalar_lea.sflag [#allocation6], %s248_s24  ;;  %s689_s12 = scalar_lea.vmem %s934_s9, 64 }
  0x3e   : > { %331 = vperm.xlu0 %650, %v328_v5   ;;  %576 = vmatpush3.bf16.xpose.msra.mxu1 %v368_v6  ;;  %v362_v40 = vld [vmem:[#allocation2] sm:$0xff]  ;;  %p690_p8 = scmp.ne.s32.totalorder %s934_s9, %s689_s12  ;;  %p996_p10 = scmp.ne.s32.totalorder %s989_s28, 0 }
  0x3f   : > { %s777_s21 = smov [#allocation7]  }
  0x40   : > { %572 = vmatmul.mubr.msk.bf16.vlgmr.msra.gmra.mrb[0].mxu0 %vm264_vm0, %v270_v4  ;;  %v355_v36 = vld [vmem:[#allocation3] sm:$0xff]  ;;  %p691_p11 = pnand %p690_p8, %p996_p10  ;;  %s693_s13 = sshll.u32 %s777_s21, 4  ;;  %s694_s13 = int_to_ptr.vmem [resolvable:$false] %s693_s13 }
  0x41   : > { %s695_s14 = scalar_lea.vmem %s694_s13, 128  ;;  %p696_p1 = scmp.lt.s32.totalorder %s934_s9, %s694_s13 }
  0x42   : > { %p692_p13 = pneg %p691_p11  ;;  %p697_p3 = scmp.lt.s32.totalorder %s695_s14, %s689_s12 }
  0x44   : > { %p698_p5 = por %p697_p3, %p696_p1 }
  0x46   : > { %p699_p6 = pnand %p698_p5, %p692_p13 }
  0xb9   : > { %v325_v7 = vpop.permute.xlu0 %324 }
  0xbd   : > { %v332_v11 = vpop.permute.xlu0 %331 }
 0x113   : > { %v315_v8 = vpop.f32.mrb[0].mxu0 }
 0x114   : > { %v327_v9 = vmul.f32 %v325_v7, %v315_v8  ;;  %v573_v10 = vpop.f32.mrb[1].mxu0 }
 0x115   : > { %v318_v12 = vpop.f32.mrb[2].mxu0 }
 0x116   : > { %v334_v13 = vadd.f32 %v332_v11, %v327_v9  ;;  %v574_v14 = vpop.f32.mrb[3].mxu0 }
 0x118   : > { %v336_v15 = vsel %vm335_vm2, %v334_v13, -inf }
 0x119   : > { %v337_v16 = vrot.slane %v336_v15, 4 }
 0x11b   : > { %v338_v17 = vmax.f32 %v336_v15, %v337_v16 }
 0x11d   : > { %v339_v18 = vrot.slane %v338_v17, 2 }
 0x11f   : > { %v340_v19 = vmax.f32 %v338_v17, %v339_v18 }
 0x121   : > { %v341_v20 = vrot.slane %v340_v19, 1 }
 0x123   : > { %v342_v21 = vmax.f32 %v340_v19, %v341_v20 }
 0x125   : > { %v343_v22 = vsub.f32 %v334_v13, %v342_v21 }
 0x127   : > { %v344_v23 = vmul.f32 1.442695, %v343_v22 }
 0x129   : > { %653 = vpow2.f32 %v344_v23 }
 0x133   : > { %v654_v24 = vpop.eup %653 }
 0x134   : > { %v346_v25 = vsel %vm335_vm2, %v654_v24, 0.0 }
 0x135   : > { %v347_v26 = vrot.slane %v346_v25, 4 }
 0x137   : > { %v348_v27 = vadd.f32 %v347_v26, %v346_v25 }
 0x139   : > { %v349_v28 = vrot.slane %v348_v27, 2 }
 0x13b   : > { %v350_v29 = vadd.f32 %v349_v28, %v348_v27 }
 0x13d   : > { %v351_v30 = vrot.slane %v350_v29, 1 }
 0x13f   : > { %v352_v31 = vadd.f32 %v351_v30, %v350_v29 }
 0x141   : > { %655 = vrcp.f32 %v352_v31 }
 0x14b   : > { %v656_v32 = vpop.eup %655 }
 0x14c   : > { %v354_v33 = vmul.f32 %v656_v32, %v654_v24 }
 0x14e   : > { %v356_v34 = vsel %vm335_vm2, %v354_v33, 0.0  ;;  %v363_v35 = vpack.c.bf16 %v354_v33, %v354_v33 }
 0x14f   : > { %357 = vadd.xlane.f32.xlu1 %v356_v34 }
 0x150   : > { %578 = vmatmul.mubr.msk.bf16.vlgmr.msra.gmra.mrb[0].mxu1 %vm335_vm2, %v363_v35 }
 0x1dc   : > { %v358_v37 = vpop.xlane.xlu1 %357 }
 0x1dd   : > { %v359_v38 = vadd.f32 %v358_v37, %v355_v36 }
 0x1df   : > { %361 = vst.msk [vmem:[#allocation3] sm:$0xff] %vm266_vm3, %v359_v38 }
 0x1e6   : > { %v416_v39 = vld [vmem:[#allocation3] sm:$0xff] }
 0x1e7   : > { %420 = vperm.xlu1 %651, %v416_v39  }
 0x223   : > { %v404_v41 = vpop.f32.mrb[0].mxu1 }
 0x224   : > { %v410_v42 = vadd.f32 %v404_v41, %v362_v40  ;;  %v579_v43 = vpop.f32.mrb[1].mxu1 }
 0x225   : > { %v407_v44 = vpop.f32.mrb[2].mxu1 }
 0x226   : > { %411 = vst.msk [vmem:[#allocation2] sm:$0xff] %vm264_vm0, %v410_v42  ;;  %v580_v45 = vpop.f32.mrb[3].mxu1 }
 0x22d   : > { %v415_v49 = vld [vmem:[#allocation2] sm:$0xff] }
 0x266   : > { %v421_v47 = vpop.permute.xlu1 %420 }
 0x267   : > { %v423_v48 = vmul.f32 %v421_v47, %v417_v46 }
 0x269   : > { %v424_v50 = vsub.f32 %v415_v49, %v423_v48 }
 0x26b   : > { %v425_v51 = vmul.f32 %v424_v50, %v424_v50 }
 0x26d   : > { %v426_v52 = vsel %vm264_vm0, %v425_v51, 0.0 }
 0x26e   : > { %427 = vadd.xlane.f32.xlu0 %v426_v52 }
 0x2fb   : > { %v428_v53 = vpop.xlane.xlu0 %427 }
 0x2fc   : > { %v429_v54 = vmax.f32 %v428_v53, 1e-24 }
 0x2fe   : > { %657 = vrsqrt.f32 %v429_v54 }
 0x308   : > { %v658_v55 = vpop.eup %657 }
 0x309   : > { %v431_v56 = vmul.f32 %v658_v55, %v424_v50 }
 0x30b   : > { %v432_v57 = vmul.f32 %v431_v56, %v431_v56 }
 0x30d   : > { %v433_v58 = vsel %vm264_vm0, %v432_v57, 0.0 }
 0x30e   : > { %434 = vadd.xlane.f32.xlu1 %v433_v58 }
 0x39b   : > { %v435_v59 = vpop.xlane.xlu1 %434 }
 0x39c   : > { %v436_v60 = vrot.slane %v435_v59, 4 }
 0x39e   : > { %v437_v61 = vadd.f32 %v436_v60, %v435_v59 }
 0x3a0   : > { %v438_v62 = vrot.slane %v437_v61, 2 }
 0x3a2   : > { %v439_v63 = vadd.f32 %v438_v62, %v437_v61 }
 0x3a4   : > { %v440_v0 = vrot.slane %v439_v63, 1 }
 0x3a6   : > { %v441_v1 = vadd.f32 %v440_v0, %v439_v63 }
 0x3a8   : > { %v442_v2 = vmax.f32 %v441_v1, 1e-24 }
 0x3aa   : > { %659 = vrsqrt.f32 %v442_v2 }
 0x3b4   : > { %v660_v3 = vpop.eup %659 }
 0x3b5   : > { %v444_v4 = vmul.f32 %v660_v3, %v431_v56 }
 0x3b7   : > { %v445_v5 = vpack.c.bf16 %v444_v4, %v444_v4 }
 0x3b9   : > { %447 = vst.msk [vmem:[%s250_s29] sm:$0xf] %vm446_vm4, %v445_v5 }
 0x3ba   : > { %702 = shalt.err (!%p699_p6)
}
 0x3bb   : > { %s703_s15 = scalar_lea.hbm %s932_s8, 64  ;;  %s707_s24 = scalar_lea.hbm %s984_s5, 128 }
 0x3bc   : > { %p704_p7 = scmp.ne.s32.totalorder %s932_s8, %s703_s15  ;;  %p708_p0 = scmp.lt.u32.totalorder %s932_s8, %s984_s5 }
 0x3bd   : > { %p709_p2 = scmp.lt.u32.totalorder %s707_s24, %s703_s15  ;;  %p711_p8 = scmp.lt.u32.totalorder %s703_s15, %s932_s8 }
 0x3be   : > { %p705_p9 = pnand %p704_p7, %p996_p10 }
 0x3bf   : > { %p710_p4 = por %p709_p2, %p708_p0 }
 0x3c0   : > { %p706_p12 = pneg %p705_p9 }
 0x3c1   : > { %p712_p11 = por %p711_p8, %p710_p4 }
 0x3c3   : > { %p713_p13 = pnand %p712_p11, %p706_p12 }
 0x3c5   : > { %716 = shalt.err (!%p713_p13)
}
 0x3c6   : > { %585 = dma.vmem_to_hbm [thread:$0]  (%p996_p10), %s934_s9, 64, %s932_s8, %s449_s11  }
 0x3c7 PF: > { %p597_p1 = scmp.ge.s32.totalorder %s771_s23, 2  ;;  %s474_s29 = sand.u32 1, %s751_s18  }
 0x3c8   : > { %p997_p3 = scmp.ne.s32.totalorder %s990_s30, 0  ;;  %s475_s7 = scalar_lea.sflag [#allocation6], %s474_s29 }
 0x3ca   : > { %p592_p5 = pnand %p597_p1, %p997_p3 }
 0x3cc   : > { %746 = dma.done.wait (!%p592_p5), %s475_s7, 64  }
 0x3cd   : > { %748 = vsyncadd (!%p592_p5), %s475_s7, 4294967232  ;;  %s19_s23 = sadd.s32 1, %s771_s23   ;;  %s998_s18 = smov %s755_s19 }
 0x3ce   : > { %p16_p6 = scmp.ge.s32.totalorder %s19_s23, 4   ;;  %s999_s19 = smov %s759_s20 }
 0x3cf   : > { %s1000_s20 = smov %s861_s6  ;;  %s1001_s21 = smov %s767_s22 }
 0x3d0   : > { %s1002_s22 = smov %s1004_s26  ;;  %18 = sbr.rel (!%p16_p6) target bundleno = 5 (0x5), region = 88 }
 0x3d7   :  { %480 = vsyncpa [#allocation5], 1 }
 0x3d8   :  { %482 = vsyncpa [#allocation5 + $0x1], 1 }
 0x3d9   :  { %483 = vsyncpa [#allocation6], 1 }
 0x3da   :  { %485 = vsyncpa [#allocation6 + $0x1], 1 }

</bundles_post_ra>
